<compile_context>
chip_gen: v6e
topology: v6e:2x2x1
jax: 0.10.0
libtpu: 0.0.40
codegen_flags: <defaults>
</compile_context>

<pallas_src>
import functools

import jax
import jax.numpy as jnp
from jax.experimental import pallas as pl
from jax.experimental.pallas import tpu as pltpu


def _round_up(x, m):
    return (x + m - 1) // m * m


def _critic_kernel(x_ref, w1_ref, b1_ref, w2_ref, b2_ref, w3_ref, b3_ref,
                   o_ref):
    # Layer 1: (TB, S) @ (S, H) + (1, H), ReLU   (MXU, f32 accumulation)
    h1 = jnp.dot(x_ref[...], w1_ref[...], preferred_element_type=jnp.float32)
    h1 = jnp.maximum(h1 + b1_ref[...], 0.0)
    # Layer 2: (TB, H) @ (H, H) + (1, H), ReLU   (MXU)
    h2 = jnp.dot(h1, w2_ref[...], preferred_element_type=jnp.float32)
    h2 = jnp.maximum(h2 + b2_ref[...], 0.0)
    # Layer 3: H -> 1.  VPU multiply + XLU lane reduction; w3 is a (1, H)
    # row and b3 an SMEM scalar (no 1-output-column MXU matmul).
    v = jnp.sum(h2 * w3_ref[...], axis=-1, keepdims=True)  # (TB, 1), f32
    o_ref[...] = (v + b3_ref[0, 0]).astype(o_ref.dtype)


@functools.partial(jax.jit, static_argnames=("batch_tile",))
def critic_forward(state, params, *, batch_tile=256):
    """state: (B, state_dim) f32 -> value: (B, 1) f32.

    batch_tile: rows per grid step.  256 (or 512) on v6e/v7x, 128 on v5e.
    Ragged / small batches are zero-padded up to a sublane-aligned tile.
    """
    w1, b1, w2, b2, w3, b3 = params
    B, S = state.shape
    H = w1.shape[1]

    # Tile / padding plan (handles ragged B instead of asserting).
    tile = min(batch_tile, _round_up(B, 8))
    tile = _round_up(tile, 8)
    Bp = _round_up(B, tile)
    if Bp != B:
        state = jnp.pad(state, ((0, Bp - B), (0, 0)))
    grid = (Bp // tile,)

    # w3 is stored (H, 1); the kernel wants it as a lane-dense (1, H) row.
    w3_row = w3.reshape(1, H)

    # Explicit VMEM budget: resident weights (double-buffered by the default
    # pipeliner), double-buffered input/output tiles, plus live activations.
    f32 = 4
    w_bytes = (S * H + H + H * H + H + H + 1) * f32
    io_bytes = (tile * S + tile) * f32
    act_bytes = 4 * tile * H * f32
    need = 2 * w_bytes + 2 * io_bytes + act_bytes + (2 << 20)
    vmem_limit = int(min(max(need, 32 << 20), 64 << 20))

    full = lambda i: (0, 0)  # weights / biases resident for every batch tile

    out = pl.pallas_call(
        _critic_kernel,
        out_shape=jax.ShapeDtypeStruct((Bp, 1), jnp.float32),
        grid_spec=pltpu.PrefetchScalarGridSpec(
            num_scalar_prefetch=0,
            grid=grid,
            in_specs=[
                pl.BlockSpec((tile, S), lambda i: (i, 0)),  # state tile
                pl.BlockSpec((S, H), full),                 # W1
                pl.BlockSpec((1, H), full),                 # b1
                pl.BlockSpec((H, H), full),                 # W2
                pl.BlockSpec((1, H), full),                 # b2
                pl.BlockSpec((1, H), full),                 # W3 as lane row
                pl.BlockSpec(memory_space=pltpu.MemorySpace.SMEM),  # b3
            ],
            out_specs=pl.BlockSpec((tile, 1), lambda i: (i, 0)),
        ),
        compiler_params=pltpu.CompilerParams(
            dimension_semantics=("parallel",),
            vmem_limit_bytes=vmem_limit),
    )(state, w1, b1, w2, b2, w3_row, b3)
    return out[:B]


def init_critic_params(key, state_dim, net_width):
    """Deterministic init mimicking nn.Linear (uniform +/- 1/sqrt(fan_in))."""
    ks = jax.random.split(key, 6)

    def linear(kw, kb, fan_in, fan_out):
        bound = 1.0 / jnp.sqrt(float(fan_in))
        w = jax.random.uniform(kw, (fan_in, fan_out), jnp.float32,
                               -bound, bound)
        b = jax.random.uniform(kb, (1, fan_out), jnp.float32, -bound, bound)
        return w, b

    w1, b1 = linear(ks[0], ks[1], state_dim, net_width)
    w2, b2 = linear(ks[2], ks[3], net_width, net_width)
    w3, b3 = linear(ks[4], ks[5], net_width, 1)
    return (w1, b1, w2, b2, w3, b3)


def critic_reference(state, params):
    """Plain-JAX reference for correctness check."""
    w1, b1, w2, b2, w3, b3 = params
    v = jnp.maximum(state @ w1 + b1, 0.0)
    v = jnp.maximum(v @ w2 + b2, 0.0)
    return v @ w3 + b3


if __name__ == "__main__":
    key = jax.random.PRNGKey(0)
    k_param, k_state = jax.random.split(key)

    batch, state_dim, net_width = 8, 16, 32
    params = init_critic_params(k_param, state_dim, net_width)
    state = jax.random.normal(k_state, (batch, state_dim), jnp.float32)

    out = jax.block_until_ready(critic_forward(state, params))
    ref = critic_reference(state, params)
    assert out.shape == (batch, 1), out.shape
    assert jnp.allclose(out, ref, atol=1e-5, rtol=1e-5), (out, ref)

    # Ragged, multi-tile batch: exercises zero-padding + a full 256-row tile
    # with a 2-step grid (previously this shape hit a hard assert).
    state2 = jax.random.normal(jax.random.PRNGKey(1), (300, state_dim),
                               jnp.float32)
    out2 = jax.block_until_ready(critic_forward(state2, params))
    ref2 = critic_reference(state2, params)
    assert out2.shape == (300, 1), out2.shape
    assert jnp.allclose(out2, ref2, atol=1e-5, rtol=1e-5)

    print("KERNEL_OK")
</pallas_src>

<mosaic_0001>
module attributes {stable_mosaic.version = 11 : i64} {
  func.func @_critic_kernel(%arg0: i32, %arg1: memref<8x16xf32, #tpu.memory_space<vmem>>, %arg2: memref<16x32xf32, #tpu.memory_space<vmem>>, %arg3: memref<1x32xf32, #tpu.memory_space<vmem>>, %arg4: memref<32x32xf32, #tpu.memory_space<vmem>>, %arg5: memref<1x32xf32, #tpu.memory_space<vmem>>, %arg6: memref<1x32xf32, #tpu.memory_space<vmem>>, %arg7: memref<1x1xf32, #tpu.memory_space<smem>>, %arg8: memref<8x1xf32, #tpu.memory_space<vmem>>) attributes {dimension_semantics = [#tpu.dimension_semantics<parallel>], iteration_bounds = array<i64: 1>, scalar_prefetch = 0 : i64, scratch_operands = 0 : i64, tpu.core_type = #tpu.core_type<tc>, window_params = [{transform_indices = @transform_0, window_bounds = array<i64: 8, 16>}, {pipeline_mode = #tpu.pipeline_mode<synchronous>, transform_indices = @transform_1, window_bounds = array<i64: 16, 32>}, {pipeline_mode = #tpu.pipeline_mode<synchronous>, transform_indices = @transform_2, window_bounds = array<i64: 1, 32>}, {pipeline_mode = #tpu.pipeline_mode<synchronous>, transform_indices = @transform_3, window_bounds = array<i64: 32, 32>}, {pipeline_mode = #tpu.pipeline_mode<synchronous>, transform_indices = @transform_4, window_bounds = array<i64: 1, 32>}, {pipeline_mode = #tpu.pipeline_mode<synchronous>, transform_indices = @transform_5, window_bounds = array<i64: 1, 32>}, {transform_indices = @transform_6, window_bounds = array<i64: 1, 1>}, {transform_indices = @transform_7, window_bounds = array<i64: 8, 1>}]} {
    %c0 = arith.constant 0 : index
    %c0_0 = arith.constant 0 : index
    %0 = vector.load %arg1[%c0, %c0_0] : memref<8x16xf32, #tpu.memory_space<vmem>>, vector<8x16xf32>
    %c0_1 = arith.constant 0 : index
    %c0_2 = arith.constant 0 : index
    %1 = vector.load %arg2[%c0_1, %c0_2] : memref<16x32xf32, #tpu.memory_space<vmem>>, vector<16x32xf32>
    %cst = arith.constant dense<0.000000e+00> : vector<8x32xf32>
    %2 = tpu.matmul %0, %1, %cst {dimension_numbers = #tpu.dot_dimension_numbers<[1], [0], [0], [1], [0, 0, 1, 1], [], []>} : vector<8x16xf32>, vector<16x32xf32>, vector<8x32xf32> -> vector<8x32xf32>
    %c0_3 = arith.constant 0 : index
    %c0_4 = arith.constant 0 : index
    %3 = vector.load %arg3[%c0_3, %c0_4] : memref<1x32xf32, #tpu.memory_space<vmem>>, vector<1x32xf32>
    %4 = vector.broadcast %3 : vector<1x32xf32> to vector<8x32xf32>
    %5 = arith.addf %2, %4 : vector<8x32xf32>
    %cst_5 = arith.constant 0.000000e+00 : f32
    %6 = vector.broadcast %cst_5 : f32 to vector<8x32xf32>
    %7 = arith.maximumf %5, %6 : vector<8x32xf32>
    %c0_6 = arith.constant 0 : index
    %c0_7 = arith.constant 0 : index
    %8 = vector.load %arg4[%c0_6, %c0_7] : memref<32x32xf32, #tpu.memory_space<vmem>>, vector<32x32xf32>
    %cst_8 = arith.constant dense<0.000000e+00> : vector<8x32xf32>
    %9 = tpu.matmul %7, %8, %cst_8 {dimension_numbers = #tpu.dot_dimension_numbers<[1], [0], [0], [1], [0, 0, 1, 1], [], []>} : vector<8x32xf32>, vector<32x32xf32>, vector<8x32xf32> -> vector<8x32xf32>
    %c0_9 = arith.constant 0 : index
    %c0_10 = arith.constant 0 : index
    %10 = vector.load %arg5[%c0_9, %c0_10] : memref<1x32xf32, #tpu.memory_space<vmem>>, vector<1x32xf32>
    %11 = vector.broadcast %10 : vector<1x32xf32> to vector<8x32xf32>
    %12 = arith.addf %9, %11 : vector<8x32xf32>
    %cst_11 = arith.constant 0.000000e+00 : f32
    %13 = vector.broadcast %cst_11 : f32 to vector<8x32xf32>
    %14 = arith.maximumf %12, %13 : vector<8x32xf32>
    %c0_12 = arith.constant 0 : index
    %c0_13 = arith.constant 0 : index
    %15 = vector.load %arg6[%c0_12, %c0_13] : memref<1x32xf32, #tpu.memory_space<vmem>>, vector<1x32xf32>
    %16 = vector.broadcast %15 : vector<1x32xf32> to vector<8x32xf32>
    %17 = arith.mulf %14, %16 : vector<8x32xf32>
    %cst_14 = arith.constant dense<0.000000e+00> : vector<8xf32>
    %18 = vector.multi_reduction <add>, %17, %cst_14 [1] : vector<8x32xf32> to vector<8xf32>
    %19 = vector.shape_cast %18 : vector<8xf32> to vector<8x1xf32>
    %c0_15 = arith.constant 0 : index
    %c0_16 = arith.constant 0 : index
    %20 = memref.load %arg7[%c0_15, %c0_16] : memref<1x1xf32, #tpu.memory_space<smem>>
    %21 = vector.broadcast %20 : f32 to vector<8x1xf32>
    %22 = arith.addf %19, %21 : vector<8x1xf32>
    %c0_17 = arith.constant 0 : index
    %c0_18 = arith.constant 0 : index
    %23 = vector.load %arg8[%c0_17, %c0_18] : memref<8x1xf32, #tpu.memory_space<vmem>>, vector<8x1xf32>
    tpu.vector_store %arg8[%c0_17, %c0_18], %22 {strides = array<i32>} : memref<8x1xf32, #tpu.memory_space<vmem>>, vector<8x1xf32>,
    return
  }
  func.func @transform_0(%arg0: i32) -> (i32, i32) {
    %c0_i32 = arith.constant 0 : i32
    %c0_i32_0 = arith.constant 0 : i32
    return %arg0, %c0_i32 : i32, i32
  }
  func.func @transform_1(%arg0: i32) -> (i32, i32) {
    %c0_i32 = arith.constant 0 : i32
    %c0_i32_0 = arith.constant 0 : i32
    %c0_i32_1 = arith.constant 0 : i32
    return %c0_i32, %c0_i32_0 : i32, i32
  }
  func.func @transform_2(%arg0: i32) -> (i32, i32) {
    %c0_i32 = arith.constant 0 : i32
    %c0_i32_0 = arith.constant 0 : i32
    %c0_i32_1 = arith.constant 0 : i32
    return %c0_i32, %c0_i32_0 : i32, i32
  }
  func.func @transform_3(%arg0: i32) -> (i32, i32) {
    %c0_i32 = arith.constant 0 : i32
    %c0_i32_0 = arith.constant 0 : i32
    %c0_i32_1 = arith.constant 0 : i32
    return %c0_i32, %c0_i32_0 : i32, i32
  }
  func.func @transform_4(%arg0: i32) -> (i32, i32) {
    %c0_i32 = arith.constant 0 : i32
    %c0_i32_0 = arith.constant 0 : i32
    %c0_i32_1 = arith.constant 0 : i32
    return %c0_i32, %c0_i32_0 : i32, i32
  }
  func.func @transform_5(%arg0: i32) -> (i32, i32) {
    %c0_i32 = arith.constant 0 : i32
    %c0_i32_0 = arith.constant 0 : i32
    %c0_i32_1 = arith.constant 0 : i32
    return %c0_i32, %c0_i32_0 : i32, i32
  }
  func.func @transform_6(%arg0: i32) -> (i32, i32) {
    %c0_i32 = arith.constant 0 : i32
    %c0_i32_0 = arith.constant 0 : i32
    %c0_i32_1 = arith.constant 0 : i32
    return %c0_i32, %c0_i32_0 : i32, i32
  }
  func.func @transform_7(%arg0: i32) -> (i32, i32) {
    %c0_i32 = arith.constant 0 : i32
    %c0_i32_0 = arith.constant 0 : i32
    return %arg0, %c0_i32 : i32, i32
  }
}

</mosaic_0001>

<bundles_post_ra>
// kernel: critic_forward.1
= control target key start
LH: loop header
LB: loop body
LE: loop exit
PB: predicated region body
PF: predicated region fallthrough
CT: control target
= control target key end

     0   :  { %13 = vsyncpa [#allocation4], 0  ;;  %s432_s0 = inlined_call_operand.hbm [shape: f32[8,16], index: 0, kind: input, shape index: {}]   ;;  %s433_s1 = inlined_call_operand.hbm [shape: f32[16,32], index: 1, kind: input, shape index: {}]   ;;  %s434_s2 = inlined_call_operand.vmem [shape: f32[1,32], index: 2, kind: input, shape index: {}]   ;;  %s435_s3 = inlined_call_operand.hbm [shape: f32[32,32], index: 3, kind: input, shape index: {}]   ;;  %s436_s4 = inlined_call_operand.vmem [shape: f32[1,32], index: 4, kind: input, shape index: {}]   ;;  %s437_s5 = inlined_call_operand.vmem [shape: f32[1,32], index: 5, kind: input, shape index: {}]   ;;  %s438_s6 = inlined_call_operand.<no memory space> [shape: f32[1,1], index: 6, kind: input, shape index: {}]   ;;  %s439_s7 = inlined_call_operand.vmem [shape: f32[8,1], index: 7, kind: output, shape index: {}]  }
   0x1   :  { %14 = vsyncpa [#allocation6], 0  ;;  %s361_s24 = smov [#allocation5]  }
   0x2   :  { %s30_s25 = sshll.u32 %s361_s24, 4  ;;  %s31_s25 = int_to_ptr.vmem [resolvable:$true] %s30_s25 }
   0x3   :  { %s305_s26 = scalar_lea.vmem %s31_s25, 256  ;;  %p310_p1 = scmp.lt.s32.totalorder %s31_s25, %s31_s25 }
   0x4   :  { %p306_p0 = scmp.ne.s32.totalorder %s31_s25, %s305_s26  ;;  %p311_p2 = scmp.lt.s32.totalorder %s305_s26, %s305_s26 }
   0x6   :  { %p312_p3 = por %p311_p2, %p310_p1 }
   0x8   :  { %p313_p4 = pnand %p312_p3, %p306_p0 }
   0xa   :  { %316 = shalt.err (!%p313_p4)
}
   0xb   :  { %s362_s27 = smov 128   ;;  %s363_s28 = smov 8  }
   0xc   :  { %36 = dma.hbm_to_vmem [thread:$0]  %s433_s1, 256, %s31_s25, [#allocation6], %s362_s27, %s362_s27, %s363_s28  }
   0xd   :  { %s364_s8 = smov [#allocation3]   ;;  %s365_s10 = smov [#allocation7]  }
   0xe   :  { %s21_s9 = sshll.u32 %s364_s8, 4  ;;  %s44_s11 = sshll.u32 %s365_s10, 4  ;;  %s22_s9 = int_to_ptr.vmem [resolvable:$true] %s21_s9  ;;  %s45_s11 = int_to_ptr.vmem [resolvable:$true] %s44_s11 }
   0xf   :  { %s325_s12 = scalar_lea.vmem %s22_s9, 128  ;;  %p330_p6 = scmp.lt.s32.totalorder %s22_s9, %s22_s9 }
  0x10   :  { %p326_p5 = scmp.ne.s32.totalorder %s22_s9, %s325_s12  ;;  %p331_p7 = scmp.lt.s32.totalorder %s325_s12, %s325_s12 }
  0x12   :  { %p332_p8 = por %p331_p7, %p330_p6 }
  0x14   :  { %p333_p9 = pnand %p332_p8, %p326_p5 }
  0x16   :  { %336 = shalt.err (!%p333_p9)
}
  0x17   :  { %24 = dma.hbm_to_vmem [thread:$0]  %s432_s0, 128, %s22_s9, [#allocation4]  }
  0x18   :  { %s345_s15 = scalar_lea.vmem %s45_s11, 512  ;;  %p350_p11 = scmp.lt.s32.totalorder %s45_s11, %s45_s11 }
  0x19   :  { %p346_p10 = scmp.ne.s32.totalorder %s45_s11, %s345_s15  ;;  %p351_p12 = scmp.lt.s32.totalorder %s345_s15, %s345_s15 }
  0x1b   :  { %p352_p13 = por %p351_p12, %p350_p11 }
  0x1d   :  { %p353_p0 = pnand %p352_p13, %p346_p10 }
  0x1f   :  { %356 = shalt.err (!%p353_p0)
}
  0x20   :  { %50 = dma.hbm_to_vmem [thread:$0]  %s435_s3, 512, %s45_s11, [#allocation6], %s362_s27, %s362_s27, %s363_s28  }
  0x21   :  { %357 = dma.done.wait [#allocation4], 128  }
  0x22   :  { %358 = vsyncadd [#allocation4], 4294967168 }
  0x23   :  { %359 = dma.done.wait [#allocation6], 768  }
  0x24   :  { %360 = vsyncadd [#allocation6], 4294966528  ;;  %v366_v0 = vmov 0.0   ;;  %vm367_vm0 = vmmov 0   ;;  %v68_v1 = vld [vmem:[#allocation5 + $0x8] sm:$0xff]  ;;  %v67_v2 = vld [vmem:[#allocation5] sm:$0xff]  ;;  %v249_v21 = vstv %s438_s6 }
  0x25   :  { %272 = vmatprep.subr.mxu0 %v366_v0  ;;  %276 = vmatprep.mubr.msk.f32.mxu0 %vm367_vm0, %v366_v0  ;;  %v66_v3 = vld [vmem:[#allocation3] sm:$0xff]  ;;  %vm76_vm1 = vcmask 130048   ;;  %v154_v4 = vld [vmem:[#allocation7 + $0x18] sm:$0xff]  ;;  %v153_v5 = vld [vmem:[#allocation7 + $0x10] sm:$0xff]  ;;  %vm162_vm2 = vcmask 261120   ;;  %vm251_vm3 = vcmask 7168  }
  0x26   :  { %279 = vmatprep.subr.mxu1 %v366_v0  ;;  %287 = vmatprep.mubr.msk.f32.mxu1 %vm367_vm0, %v366_v0  ;;  %v152_v6 = vld [vmem:[#allocation7 + $0x8] sm:$0xff]  ;;  %v151_v7 = vld [vmem:[#allocation7] sm:$0xff] }
  0x27   :  { %273 = vmatpush3.msra.mxu0 %v68_v1  ;;  %280 = vmatpush3.msra.mxu1 %v154_v4  ;;  %v259_v8 = vld [vmem:[%s434_s2] ss:$0 sm:$0xff] }
  0x28   :  { %274 = vmatprep.subr.mxu0 %v366_v0  ;;  %281 = vmatprep.subr.mxu1 %v366_v0  ;;  %v261_v13 = vld [vmem:[%s436_s4] ss:$0 sm:$0xff] }
  0x29   :  { %275 = vmatpush3.msra.mxu0 %v67_v2  ;;  %282 = vmatpush3.msra.mxu1 %v153_v5  ;;  %v263_v17 = vld [vmem:[%s437_s5] ss:$0 sm:$0xff] }
  0x2a   :  { %277 = vmatmul.mubr.msk.f32.vlgmr.msra.gmra.mxu0 %vm76_vm1, %v66_v3  ;;  %283 = vmatprep.subr.mxu1 %v366_v0 }
  0x2b   :  { %284 = vmatpush3.msra.mxu1 %v152_v6 }
  0x2c   :  { %285 = vmatprep.subr.mxu1 %v366_v0 }
  0x2d   :  { %286 = vmatpush3.msra.mxu1 %v151_v7 }
  0xea   :  { %v146_v9 = vpop.f32.mrf.mxu0 }
  0xeb   :  { %v147_v10 = vadd.f32 %v259_v8, %v146_v9 }
  0xec   :  { %v278_v11 = vpop.f32.mrf.mxu0 }
  0xed   :  { %v150_v12 = vmax.f32 %v147_v10, 0.0 }
  0xef   :  { %288 = vmatmul.mubr.msk.f32.vlgmr.msra.gmra.mxu1 %vm162_vm2, %v150_v12 }
 0x1af   :  { %v232_v14 = vpop.f32.mrf.mxu1 }
 0x1b0   :  { %v233_v15 = vadd.f32 %v261_v13, %v232_v14 }
 0x1b1   :  { %v289_v16 = vpop.f32.mrf.mxu1 }
 0x1b2   :  { %v236_v18 = vmax.f32 %v233_v15, 0.0 }
 0x1b4   :  { %v244_v19 = vmul.f32 %v263_v17, %v236_v18 }
 0x1b6   :  { %v245_v20 = vsel %vm162_vm2, %v244_v19, 0.0 }
 0x1b7   :  { %246 = vadd.xlane.f32.xlu0 %v245_v20 }
 0x240   :  { %v247_v22 = vpop.xlane.xlu0 %246 }
 0x241   :  { %v250_v23 = vadd.f32 %v249_v21, %v247_v22 }
 0x243   :  { %252 = vst.msk [vmem:[%s439_s7] sm:$0xff] %vm251_vm3, %v250_v23 }
 0x244   :  { %257 = vsyncpa [#allocation4], 1 }
 0x245   :  { %258 = vsyncpa [#allocation6], 1 }

</bundles_post_ra>
